<compile_context>
chip_gen: v7x
topology: tpu7x:2x2x1
jax: 0.10.0
libtpu: 0.0.40
codegen_flags: <defaults>
</compile_context>

<pallas_src>
import jax
import jax.numpy as jnp
from jax import lax
from jax.experimental import pallas as pl
from jax.experimental.pallas import tpu as pltpu

# ---- small synthetic config (consistent with SiglipVisionConfig semantics) ----
B    = 2                        # batch
C    = 3                        # num_channels
IMG  = 16                       # image_size
P    = 8                        # patch_size
D    = 32                       # hidden_size
I    = 64                       # intermediate_size
H    = 4                        # num_attention_heads
DH   = D // H                   # head dim
EPS  = 1e-6                     # layer_norm_eps
NP   = (IMG // P) * (IMG // P)  # patches per image (4)
CPP  = C * P * P                # flattened patch length (192)
CPP_PAD = 256                   # patch-matmul K padded to a multiple of 128
D_PAD   = 128                   # lane-dense output width

# packed vector-slab row layout: pos rows first, then the 8 per-feature vectors
ROW_BP, ROW_LN1G, ROW_LN1B, ROW_LN2G, ROW_LN2B, ROW_B2, ROW_LNFG, ROW_LNFB = \
    range(NP, NP + 8)
N_VEC = NP + 8


def _layernorm(x, g, b):
    mu = jnp.mean(x, axis=-1, keepdims=True)
    var = jnp.mean((x - mu) ** 2, axis=-1, keepdims=True)
    return (x - mu) * lax.rsqrt(var + EPS) * g + b


def _gelu_tanh(x):
    # gelu_pytorch_tanh (SigLIP's hidden activation)
    c = 0.7978845608028654  # sqrt(2/pi)
    return 0.5 * x * (1.0 + jnp.tanh(c * (x + 0.044715 * x * x * x)))


def vit_kernel(patches_ref, wkd_ref, wdk_ref, bdk_ref, vecs_ref, out_ref,
               qkv_sc, ctx_sc):
    # ---- unpack packed slabs (static ref slices only)
    wp   = wkd_ref[0:CPP_PAD, :]                 # [CPP_PAD, D] bf16
    w2   = wkd_ref[CPP_PAD:CPP_PAD + I, :]       # [I, D]       bf16
    wqkv = wdk_ref[:, 0:3 * D]                   # [D, 3D]      bf16 (q cols pre-scaled)
    wo   = wdk_ref[:, 3 * D:4 * D]               # [D, D]       bf16
    w1   = wdk_ref[:, 4 * D:4 * D + I]           # [D, I]       bf16
    bqkv = bdk_ref[:, 0:3 * D]                   # [1, 3D]      f32
    bo   = bdk_ref[:, 3 * D:4 * D]
    b1   = bdk_ref[:, 4 * D:4 * D + I]
    pos  = vecs_ref[0:NP, :]                     # [NP, D] f32 (shared across images)
    bp   = vecs_ref[ROW_BP:ROW_BP + 1, :]
    ln1g = vecs_ref[ROW_LN1G:ROW_LN1G + 1, :]
    ln1b = vecs_ref[ROW_LN1B:ROW_LN1B + 1, :]
    ln2g = vecs_ref[ROW_LN2G:ROW_LN2G + 1, :]
    ln2b = vecs_ref[ROW_LN2B:ROW_LN2B + 1, :]
    b2   = vecs_ref[ROW_B2:ROW_B2 + 1, :]
    lnfg = vecs_ref[ROW_LNFG:ROW_LNFG + 1, :]
    lnfb = vecs_ref[ROW_LNFB:ROW_LNFB + 1, :]

    # ---- SiglipVisionEmbeddings for THIS image: conv-as-matmul, bf16 in / f32 acc
    patches = patches_ref[0]                                             # [NP, CPP_PAD]
    emb = (jnp.dot(patches, wp, preferred_element_type=jnp.float32)
           + bp + pos)                                                   # [NP, D] f32

    # ---- encoder layer: LN1 -> per-image multi-head self-attention -> residual
    h1 = _layernorm(emb, ln1g, ln1b)
    qkv_sc[...] = (jnp.dot(h1.astype(jnp.bfloat16), wqkv,
                           preferred_element_type=jnp.float32) + bqkv)   # [NP, 3D]

    # Per-head attention (no mask: only this image's patches are present).
    # Head blocks come back as static VMEM ref slices; contexts are written to a
    # scratch ref, so there is no H-way vreg lane concat.
    for hh in range(H):
        q_h = qkv_sc[:,          hh * DH:          (hh + 1) * DH].astype(jnp.bfloat16)
        k_h = qkv_sc[:,      D + hh * DH:      D + (hh + 1) * DH].astype(jnp.bfloat16)
        v_h = qkv_sc[:, 2 * D + hh * DH: 2 * D + (hh + 1) * DH].astype(jnp.bfloat16)
        s = jnp.einsum('nd,md->nm', q_h, k_h,
                       preferred_element_type=jnp.float32)               # [NP, NP]
        s = s - jnp.max(s, axis=-1, keepdims=True)
        pr = jnp.exp(s)
        pr = pr * pl.reciprocal(jnp.sum(pr, axis=-1, keepdims=True), approx=True)
        ctx_sc[:, hh * DH:(hh + 1) * DH] = jnp.dot(
            pr.astype(jnp.bfloat16), v_h, preferred_element_type=jnp.float32)

    attn = jnp.dot(ctx_sc[...].astype(jnp.bfloat16), wo,
                   preferred_element_type=jnp.float32) + bo
    x = emb + attn

    # ---- LN2 -> MLP (gelu-tanh) -> residual
    h2 = _layernorm(x, ln2g, ln2b)
    m = jnp.dot(h2.astype(jnp.bfloat16), w1, preferred_element_type=jnp.float32) + b1
    m = _gelu_tanh(m)
    m = jnp.dot(m.astype(jnp.bfloat16), w2, preferred_element_type=jnp.float32) + b2
    x = x + m

    # ---- final LayerNorm; lane-dense store (D zero-padded to 128 lanes)
    y = _layernorm(x, lnfg, lnfb)                                        # [NP, D]
    out_ref[0] = jnp.concatenate(
        [y, jnp.zeros((NP, D_PAD - D), jnp.float32)], axis=-1)


def pack_params(params):
    """One-time packing of PyTorch-layout parameters into kernel slabs
    (hoisted out of the per-call wrapper)."""
    scale = DH ** -0.5                      # fold 1/sqrt(head_dim) into q proj
    w_kd = jnp.concatenate(
        [jnp.pad(params["wp"], ((0, CPP_PAD - CPP), (0, 0))), params["w2"]],
        axis=0).astype(jnp.bfloat16)                                     # [CPP_PAD+I, D]
    w_dk = jnp.concatenate(
        [params["wq"] * scale, params["wk"], params["wv"],
         params["wo"], params["w1"]], axis=1).astype(jnp.bfloat16)       # [D, 4D+I]
    b_dk = jnp.concatenate(
        [params["bq"] * scale, params["bk"], params["bv"],
         params["bo"], params["b1"]], axis=1).astype(jnp.float32)        # [1, 4D+I]
    vecs = jnp.concatenate(
        [params["pos"], params["bp"], params["ln1g"], params["ln1b"],
         params["ln2g"], params["ln2b"], params["b2"],
         params["lnfg"], params["lnfb"]], axis=0).astype(jnp.float32)    # [NP+8, D]
    return w_kd, w_dk, b_dk, vecs


@jax.jit
def siglip_vision_transformer(pixels, w_kd, w_dk, b_dk, vecs):
    # pixels: [B, C, IMG, IMG] (NCHW, PyTorch convention)
    b, c, hgt, wid = pixels.shape
    nh, nw = hgt // P, wid // P

    # TODO(synk): express the patch unfold via a BlockSpec index_map over the
    # NCHW image instead of this XLA transpose round-trip (matters at 224x224).
    patches = pixels.reshape(b, c, nh, P, nw, P)
    patches = patches.transpose(0, 2, 4, 1, 3, 5).reshape(b, nh * nw, CPP)
    patches = jnp.pad(
        patches, ((0, 0), (0, 0), (0, CPP_PAD - CPP))).astype(jnp.bfloat16)

    flops = 2 * b * NP * (CPP_PAD * D + D * 3 * D + 2 * H * NP * DH
                          + D * D + 2 * D * I)
    transcendentals = b * NP * (H * NP + I + 3)
    bytes_accessed = (patches.size * 2 + w_kd.size * 2 + w_dk.size * 2
                      + b_dk.size * 4 + vecs.size * 4 + b * NP * D_PAD * 4)

    out = pl.pallas_call(
        vit_kernel,
        out_shape=jax.ShapeDtypeStruct((b, NP, D_PAD), jnp.float32),
        grid_spec=pltpu.PrefetchScalarGridSpec(
            num_scalar_prefetch=0,
            grid=(b,),
            in_specs=[
                pl.BlockSpec((1, NP, CPP_PAD), lambda i: (i, 0, 0)),   # patches
                pl.BlockSpec((CPP_PAD + I, D), lambda i: (0, 0)),      # wp | w2
                pl.BlockSpec((D, 4 * D + I),   lambda i: (0, 0)),      # wqkv | wo | w1
                pl.BlockSpec((1, 4 * D + I),   lambda i: (0, 0)),      # bqkv | bo | b1
                pl.BlockSpec((N_VEC, D),       lambda i: (0, 0)),      # pos + LN/bias vecs
            ],
            out_specs=pl.BlockSpec((1, NP, D_PAD), lambda i: (i, 0, 0)),
            scratch_shapes=[pltpu.VMEM((NP, 3 * D), jnp.float32),      # fused QKV
                            pltpu.VMEM((NP, D), jnp.float32)],         # attn context
        ),
        compiler_params=pltpu.CompilerParams(
            dimension_semantics=("parallel",)),
        cost_estimate=pl.CostEstimate(flops=flops,
                                      transcendentals=transcendentals,
                                      bytes_accessed=bytes_accessed),
    )(patches, w_kd, w_dk, b_dk, vecs)
    return out[:, :, :D]


def init_params(key):
    ks = jax.random.split(key, 18)
    std = 0.02
    n = lambda k, shp: jax.random.normal(k, shp, jnp.float32) * std
    return {
        # patch embedding: Conv2d weight [D, C, P, P] reshaped to [CPP, D]
        "wp":  n(ks[0], (D, C, P, P)).reshape(D, CPP).T,
        "bp":  n(ks[1], (1, D)),
        "pos": n(ks[2], (NP, D)),
        "ln1g": jnp.ones((1, D), jnp.float32), "ln1b": n(ks[3], (1, D)),
        "wq": n(ks[4], (D, D)), "bq": n(ks[5], (1, D)),
        "wk": n(ks[6], (D, D)), "bk": n(ks[7], (1, D)),
        "wv": n(ks[8], (D, D)), "bv": n(ks[9], (1, D)),
        "wo": n(ks[10], (D, D)), "bo": n(ks[11], (1, D)),
        "ln2g": jnp.ones((1, D), jnp.float32), "ln2b": n(ks[12], (1, D)),
        "w1": n(ks[13], (D, I)), "b1": n(ks[14], (1, I)),
        "w2": n(ks[15], (I, D)), "b2": n(ks[16], (1, D)),
        "lnfg": jnp.ones((1, D), jnp.float32), "lnfb": n(ks[17], (1, D)),
    }


def reference_forward(pixels, p):
    # pure-JAX f32 reference (per-image attention, separate QKV) for validation
    b, c, hgt, wid = pixels.shape
    nh, nw = hgt // P, wid // P
    patches = pixels.reshape(b, c, nh, P, nw, P)
    patches = patches.transpose(0, 2, 4, 1, 3, 5).reshape(b, nh * nw, c * P * P)

    def ln(x, g, bb):
        mu = x.mean(-1, keepdims=True)
        var = ((x - mu) ** 2).mean(-1, keepdims=True)
        return (x - mu) / jnp.sqrt(var + EPS) * g + bb

    emb = patches @ p["wp"] + p["bp"] + p["pos"]
    res = emb
    h = ln(emb, p["ln1g"], p["ln1b"])
    q = (h @ p["wq"] + p["bq"]).reshape(b, NP, H, DH).transpose(0, 2, 1, 3)
    k = (h @ p["wk"] + p["bk"]).reshape(b, NP, H, DH).transpose(0, 2, 1, 3)
    v = (h @ p["wv"] + p["bv"]).reshape(b, NP, H, DH).transpose(0, 2, 1, 3)
    s = jnp.einsum("bhqd,bhkd->bhqk", q, k) / (DH ** 0.5)
    a = jax.nn.softmax(s, axis=-1)
    o = jnp.einsum("bhqk,bhkd->bhqd", a, v).transpose(0, 2, 1, 3).reshape(b, NP, D)
    h = res + (o @ p["wo"] + p["bo"])
    res = h
    h2 = ln(h, p["ln2g"], p["ln2b"])
    m = jax.nn.gelu(h2 @ p["w1"] + p["b1"], approximate=True) @ p["w2"] + p["b2"]
    h = res + m
    return ln(h, p["lnfg"], p["lnfb"])


if __name__ == "__main__":
    key = jax.random.PRNGKey(0)
    kpix, kpar = jax.random.split(key)
    pixels = jax.random.normal(kpix, (B, C, IMG, IMG), jnp.float32)  # NCHW
    params = init_params(kpar)
    packed = pack_params(params)          # one-time packing, hoisted out of fwd

    out = siglip_vision_transformer(pixels, *packed)
    out = jax.block_until_ready(out)

    ref = reference_forward(pixels, params)
    assert out.shape == (B, NP, D), out.shape
    # tolerance covers bf16 MXU operands (f32 accumulate) and the
    # pl.reciprocal(approx=True) softmax denominator
    err = float(jnp.max(jnp.abs(out - ref)))
    assert jnp.allclose(out, ref, atol=4e-2, rtol=4e-2), f"max abs err {err}"
    print("KERNEL_OK")
</pallas_src>

<mosaic_0001>
module attributes {stable_mosaic.version = 11 : i64} {
  func.func @vit_kernel(%arg0: i32, %arg1: memref<1x4x256xbf16, #tpu.memory_space<vmem>>, %arg2: memref<320x32xbf16, #tpu.memory_space<vmem>>, %arg3: memref<32x192xbf16, #tpu.memory_space<vmem>>, %arg4: memref<1x192xf32, #tpu.memory_space<vmem>>, %arg5: memref<12x32xf32, #tpu.memory_space<vmem>>, %arg6: memref<1x4x128xf32, #tpu.memory_space<vmem>>, %arg7: memref<4x96xf32, #tpu.memory_space<vmem>>, %arg8: memref<4x32xf32, #tpu.memory_space<vmem>>) attributes {dimension_semantics = [#tpu.dimension_semantics<parallel>], iteration_bounds = array<i64: 2>, scalar_prefetch = 0 : i64, scratch_operands = 2 : i64, tpu.core_type = #tpu.core_type<tc>, window_params = [{transform_indices = @transform_0, window_bounds = array<i64: 1, 4, 256>}, {pipeline_mode = #tpu.pipeline_mode<synchronous>, transform_indices = @transform_1, window_bounds = array<i64: 320, 32>}, {pipeline_mode = #tpu.pipeline_mode<synchronous>, transform_indices = @transform_2, window_bounds = array<i64: 32, 192>}, {pipeline_mode = #tpu.pipeline_mode<synchronous>, transform_indices = @transform_3, window_bounds = array<i64: 1, 192>}, {pipeline_mode = #tpu.pipeline_mode<synchronous>, transform_indices = @transform_4, window_bounds = array<i64: 12, 32>}, {transform_indices = @transform_5, window_bounds = array<i64: 1, 4, 128>}]} {
    %c0 = arith.constant 0 : index
    %c0_0 = arith.constant 0 : index
    %0 = vector.load %arg2[%c0, %c0_0] : memref<320x32xbf16, #tpu.memory_space<vmem>>, vector<256x32xbf16>
    %c256 = arith.constant 256 : index
    %c0_1 = arith.constant 0 : index
    %1 = vector.load %arg2[%c256, %c0_1] : memref<320x32xbf16, #tpu.memory_space<vmem>>, vector<64x32xbf16>
    %c0_2 = arith.constant 0 : index
    %c0_3 = arith.constant 0 : index
    %2 = vector.load %arg3[%c0_2, %c0_3] : memref<32x192xbf16, #tpu.memory_space<vmem>>, vector<32x96xbf16>
    %c0_4 = arith.constant 0 : index
    %c96 = arith.constant 96 : index
    %3 = vector.load %arg3[%c0_4, %c96] : memref<32x192xbf16, #tpu.memory_space<vmem>>, vector<32x32xbf16>
    %c0_5 = arith.constant 0 : index
    %c128 = arith.constant 128 : index
    %4 = vector.load %arg3[%c0_5, %c128] : memref<32x192xbf16, #tpu.memory_space<vmem>>, vector<32x64xbf16>
    %c0_6 = arith.constant 0 : index
    %c0_7 = arith.constant 0 : index
    %5 = vector.load %arg4[%c0_6, %c0_7] : memref<1x192xf32, #tpu.memory_space<vmem>>, vector<1x96xf32>
    %c0_8 = arith.constant 0 : index
    %c96_9 = arith.constant 96 : index
    %6 = vector.load %arg4[%c0_8, %c96_9] : memref<1x192xf32, #tpu.memory_space<vmem>>, vector<1x32xf32>
    %c0_10 = arith.constant 0 : index
    %c128_11 = arith.constant 128 : index
    %7 = vector.load %arg4[%c0_10, %c128_11] : memref<1x192xf32, #tpu.memory_space<vmem>>, vector<1x64xf32>
    %c0_12 = arith.constant 0 : index
    %c0_13 = arith.constant 0 : index
    %8 = vector.load %arg5[%c0_12, %c0_13] : memref<12x32xf32, #tpu.memory_space<vmem>>, vector<4x32xf32>
    %c4 = arith.constant 4 : index
    %c0_14 = arith.constant 0 : index
    %9 = vector.load %arg5[%c4, %c0_14] : memref<12x32xf32, #tpu.memory_space<vmem>>, vector<1x32xf32>
    %c5 = arith.constant 5 : index
    %c0_15 = arith.constant 0 : index
    %10 = vector.load %arg5[%c5, %c0_15] : memref<12x32xf32, #tpu.memory_space<vmem>>, vector<1x32xf32>
    %c6 = arith.constant 6 : index
    %c0_16 = arith.constant 0 : index
    %11 = vector.load %arg5[%c6, %c0_16] : memref<12x32xf32, #tpu.memory_space<vmem>>, vector<1x32xf32>
    %c7 = arith.constant 7 : index
    %c0_17 = arith.constant 0 : index
    %12 = vector.load %arg5[%c7, %c0_17] : memref<12x32xf32, #tpu.memory_space<vmem>>, vector<1x32xf32>
    %c8 = arith.constant 8 : index
    %c0_18 = arith.constant 0 : index
    %13 = vector.load %arg5[%c8, %c0_18] : memref<12x32xf32, #tpu.memory_space<vmem>>, vector<1x32xf32>
    %c9 = arith.constant 9 : index
    %c0_19 = arith.constant 0 : index
    %14 = vector.load %arg5[%c9, %c0_19] : memref<12x32xf32, #tpu.memory_space<vmem>>, vector<1x32xf32>
    %c10 = arith.constant 10 : index
    %c0_20 = arith.constant 0 : index
    %15 = vector.load %arg5[%c10, %c0_20] : memref<12x32xf32, #tpu.memory_space<vmem>>, vector<1x32xf32>
    %c11 = arith.constant 11 : index
    %c0_21 = arith.constant 0 : index
    %16 = vector.load %arg5[%c11, %c0_21] : memref<12x32xf32, #tpu.memory_space<vmem>>, vector<1x32xf32>
    %c0_22 = arith.constant 0 : index
    %c0_23 = arith.constant 0 : index
    %c0_24 = arith.constant 0 : index
    %17 = vector.load %arg1[%c0_22, %c0_23, %c0_24] : memref<1x4x256xbf16, #tpu.memory_space<vmem>>, vector<1x4x256xbf16>
    %18 = vector.shape_cast %17 : vector<1x4x256xbf16> to vector<4x256xbf16>
    %cst = arith.constant dense<0.000000e+00> : vector<4x32xf32>
    %19 = tpu.matmul %18, %0, %cst {dimension_numbers = #tpu.dot_dimension_numbers<[1], [0], [0], [1], [0, 0, 1, 1], [], []>} : vector<4x256xbf16>, vector<256x32xbf16>, vector<4x32xf32> -> vector<4x32xf32>
    %20 = vector.broadcast %9 : vector<1x32xf32> to vector<4x32xf32>
    %21 = arith.addf %19, %20 : vector<4x32xf32>
    %22 = arith.addf %21, %8 : vector<4x32xf32>
    %cst_25 = arith.constant dense<0.000000e+00> : vector<4xf32>
    %23 = vector.multi_reduction <add>, %22, %cst_25 [1] : vector<4x32xf32> to vector<4xf32>
    %24 = vector.shape_cast %23 : vector<4xf32> to vector<4x1xf32>
    %cst_26 = arith.constant 3.200000e+01 : f32
    %25 = vector.broadcast %cst_26 : f32 to vector<4x1xf32>
    %26 = arith.divf %24, %25 : vector<4x1xf32>
    %27 = vector.broadcast %26 : vector<4x1xf32> to vector<4x32xf32>
    %28 = arith.subf %22, %27 : vector<4x32xf32>
    %29 = arith.mulf %28, %28 : vector<4x32xf32>
    %cst_27 = arith.constant dense<0.000000e+00> : vector<4xf32>
    %30 = vector.multi_reduction <add>, %29, %cst_27 [1] : vector<4x32xf32> to vector<4xf32>
    %31 = vector.shape_cast %30 : vector<4xf32> to vector<4x1xf32>
    %cst_28 = arith.constant 3.200000e+01 : f32
    %32 = vector.broadcast %cst_28 : f32 to vector<4x1xf32>
    %33 = arith.divf %31, %32 : vector<4x1xf32>
    %34 = vector.broadcast %26 : vector<4x1xf32> to vector<4x32xf32>
    %35 = arith.subf %22, %34 : vector<4x32xf32>
    %cst_29 = arith.constant 9.99999997E-7 : f32
    %36 = vector.broadcast %cst_29 : f32 to vector<4x1xf32>
    %37 = arith.addf %33, %36 : vector<4x1xf32>
    %38 = math.rsqrt %37 : vector<4x1xf32>
    %39 = vector.broadcast %38 : vector<4x1xf32> to vector<4x32xf32>
    %40 = arith.mulf %35, %39 : vector<4x32xf32>
    %41 = vector.broadcast %10 : vector<1x32xf32> to vector<4x32xf32>
    %42 = arith.mulf %40, %41 : vector<4x32xf32>
    %43 = vector.broadcast %11 : vector<1x32xf32> to vector<4x32xf32>
    %44 = arith.addf %42, %43 : vector<4x32xf32>
    %45 = arith.truncf %44 : vector<4x32xf32> to vector<4x32xbf16>
    %cst_30 = arith.constant dense<0.000000e+00> : vector<4x96xf32>
    %46 = tpu.matmul %45, %2, %cst_30 {dimension_numbers = #tpu.dot_dimension_numbers<[1], [0], [0], [1], [0, 0, 1, 1], [], []>} : vector<4x32xbf16>, vector<32x96xbf16>, vector<4x96xf32> -> vector<4x96xf32>
    %47 = vector.broadcast %5 : vector<1x96xf32> to vector<4x96xf32>
    %48 = arith.addf %46, %47 : vector<4x96xf32>
    %c0_31 = arith.constant 0 : index
    %c0_32 = arith.constant 0 : index
    %49 = vector.load %arg7[%c0_31, %c0_32] : memref<4x96xf32, #tpu.memory_space<vmem>>, vector<4x96xf32>
    tpu.vector_store %arg7[%c0_31, %c0_32], %48 {strides = array<i32>} : memref<4x96xf32, #tpu.memory_space<vmem>>, vector<4x96xf32>,
    %c0_33 = arith.constant 0 : index
    %c0_34 = arith.constant 0 : index
    %50 = vector.load %arg7[%c0_33, %c0_34] : memref<4x96xf32, #tpu.memory_space<vmem>>, vector<4x8xf32>
    %51 = arith.truncf %50 : vector<4x8xf32> to vector<4x8xbf16>
    %c0_35 = arith.constant 0 : index
    %c32 = arith.constant 32 : index
    %52 = vector.load %arg7[%c0_35, %c32] : memref<4x96xf32, #tpu.memory_space<vmem>>, vector<4x8xf32>
    %53 = arith.truncf %52 : vector<4x8xf32> to vector<4x8xbf16>
    %c0_36 = arith.constant 0 : index
    %c64 = arith.constant 64 : index
    %54 = vector.load %arg7[%c0_36, %c64] : memref<4x96xf32, #tpu.memory_space<vmem>>, vector<4x8xf32>
    %55 = arith.truncf %54 : vector<4x8xf32> to vector<4x8xbf16>
    "tpu.trace_start"() <{level = 10 : i32, message = "nd,md->nm"}> : () -> ()
    %cst_37 = arith.constant dense<0.000000e+00> : vector<4x4xf32>
    %56 = tpu.matmul %51, %53, %cst_37 {dimension_numbers = #tpu.dot_dimension_numbers<[1], [1], [0], [0], [0, 0, 1, 0], [], []>} : vector<4x8xbf16>, vector<4x8xbf16>, vector<4x4xf32> -> vector<4x4xf32>
    "tpu.trace_stop"() : () -> ()
    %cst_38 = arith.constant dense<0xFF800000> : vector<4xf32>
    %57 = vector.multi_reduction <maximumf>, %56, %cst_38 [1] : vector<4x4xf32> to vector<4xf32>
    %58 = vector.shape_cast %57 : vector<4xf32> to vector<4x1xf32>
    %59 = vector.broadcast %58 : vector<4x1xf32> to vector<4x4xf32>
    %60 = arith.subf %56, %59 : vector<4x4xf32>
    %61 = math.exp %60 : vector<4x4xf32>
    %cst_39 = arith.constant dense<0.000000e+00> : vector<4xf32>
    %62 = vector.multi_reduction <add>, %61, %cst_39 [1] : vector<4x4xf32> to vector<4xf32>
    %63 = vector.shape_cast %62 : vector<4xf32> to vector<4x1xf32>
    %64 = tpu.reciprocal %63 {approx = true} : vector<4x1xf32> -> vector<4x1xf32>
    %65 = vector.broadcast %64 : vector<4x1xf32> to vector<4x4xf32>
    %66 = arith.mulf %61, %65 : vector<4x4xf32>
    %67 = arith.truncf %66 : vector<4x4xf32> to vector<4x4xbf16>
    %cst_40 = arith.constant dense<0.000000e+00> : vector<4x8xf32>
    %68 = tpu.matmul %67, %55, %cst_40 {dimension_numbers = #tpu.dot_dimension_numbers<[1], [0], [0], [1], [0, 0, 1, 1], [], []>} : vector<4x4xbf16>, vector<4x8xbf16>, vector<4x8xf32> -> vector<4x8xf32>
    %c0_41 = arith.constant 0 : index
    %c0_42 = arith.constant 0 : index
    %69 = vector.load %arg8[%c0_41, %c0_42] : memref<4x32xf32, #tpu.memory_space<vmem>>, vector<4x8xf32>
    tpu.vector_store %arg8[%c0_41, %c0_42], %68 {strides = array<i32>} : memref<4x32xf32, #tpu.memory_space<vmem>>, vector<4x8xf32>,
    %c0_43 = arith.constant 0 : index
    %c8_44 = arith.constant 8 : index
    %70 = vector.load %arg7[%c0_43, %c8_44] : memref<4x96xf32, #tpu.memory_space<vmem>>, vector<4x8xf32>
    %71 = arith.truncf %70 : vector<4x8xf32> to vector<4x8xbf16>
    %c0_45 = arith.constant 0 : index
    %c40 = arith.constant 40 : index
    %72 = vector.load %arg7[%c0_45, %c40] : memref<4x96xf32, #tpu.memory_space<vmem>>, vector<4x8xf32>
    %73 = arith.truncf %72 : vector<4x8xf32> to vector<4x8xbf16>
    %c0_46 = arith.constant 0 : index
    %c72 = arith.constant 72 : index
    %74 = vector.load %arg7[%c0_46, %c72] : memref<4x96xf32, #tpu.memory_space<vmem>>, vector<4x8xf32>
    %75 = arith.truncf %74 : vector<4x8xf32> to vector<4x8xbf16>
    "tpu.trace_start"() <{level = 10 : i32, message = "nd,md->nm"}> : () -> ()
    %cst_47 = arith.constant dense<0.000000e+00> : vector<4x4xf32>
    %76 = tpu.matmul %71, %73, %cst_47 {dimension_numbers = #tpu.dot_dimension_numbers<[1], [1], [0], [0], [0, 0, 1, 0], [], []>} : vector<4x8xbf16>, vector<4x8xbf16>, vector<4x4xf32> -> vector<4x4xf32>
    "tpu.trace_stop"() : () -> ()
    %cst_48 = arith.constant dense<0xFF800000> : vector<4xf32>
    %77 = vector.multi_reduction <maximumf>, %76, %cst_48 [1] : vector<4x4xf32> to vector<4xf32>
    %78 = vector.shape_cast %77 : vector<4xf32> to vector<4x1xf32>
    %79 = vector.broadcast %78 : vector<4x1xf32> to vector<4x4xf32>
    %80 = arith.subf %76, %79 : vector<4x4xf32>
    %81 = math.exp %80 : vector<4x4xf32>
    %cst_49 = arith.constant dense<0.000000e+00> : vector<4xf32>
    %82 = vector.multi_reduction <add>, %81, %cst_49 [1] : vector<4x4xf32> to vector<4xf32>
    %83 = vector.shape_cast %82 : vector<4xf32> to vector<4x1xf32>
    %84 = tpu.reciprocal %83 {approx = true} : vector<4x1xf32> -> vector<4x1xf32>
    %85 = vector.broadcast %84 : vector<4x1xf32> to vector<4x4xf32>
    %86 = arith.mulf %81, %85 : vector<4x4xf32>
    %87 = arith.truncf %86 : vector<4x4xf32> to vector<4x4xbf16>
    %cst_50 = arith.constant dense<0.000000e+00> : vector<4x8xf32>
    %88 = tpu.matmul %87, %75, %cst_50 {dimension_numbers = #tpu.dot_dimension_numbers<[1], [0], [0], [1], [0, 0, 1, 1], [], []>} : vector<4x4xbf16>, vector<4x8xbf16>, vector<4x8xf32> -> vector<4x8xf32>
    %c0_51 = arith.constant 0 : index
    %c8_52 = arith.constant 8 : index
    %89 = vector.load %arg8[%c0_51, %c8_52] : memref<4x32xf32, #tpu.memory_space<vmem>>, vector<4x8xf32>
    tpu.vector_store %arg8[%c0_51, %c8_52], %88 {strides = array<i32>} : memref<4x32xf32, #tpu.memory_space<vmem>>, vector<4x8xf32>,
    %c0_53 = arith.constant 0 : index
    %c16 = arith.constant 16 : index
    %90 = vector.load %arg7[%c0_53, %c16] : memref<4x96xf32, #tpu.memory_space<vmem>>, vector<4x8xf32>
    %91 = arith.truncf %90 : vector<4x8xf32> to vector<4x8xbf16>
    %c0_54 = arith.constant 0 : index
    %c48 = arith.constant 48 : index
    %92 = vector.load %arg7[%c0_54, %c48] : memref<4x96xf32, #tpu.memory_space<vmem>>, vector<4x8xf32>
    %93 = arith.truncf %92 : vector<4x8xf32> to vector<4x8xbf16>
    %c0_55 = arith.constant 0 : index
    %c80 = arith.constant 80 : index
    %94 = vector.load %arg7[%c0_55, %c80] : memref<4x96xf32, #tpu.memory_space<vmem>>, vector<4x8xf32>
    %95 = arith.truncf %94 : vector<4x8xf32> to vector<4x8xbf16>
    "tpu.trace_start"() <{level = 10 : i32, message = "nd,md->nm"}> : () -> ()
    %cst_56 = arith.constant dense<0.000000e+00> : vector<4x4xf32>
    %96 = tpu.matmul %91, %93, %cst_56 {dimension_numbers = #tpu.dot_dimension_numbers<[1], [1], [0], [0], [0, 0, 1, 0], [], []>} : vector<4x8xbf16>, vector<4x8xbf16>, vector<4x4xf32> -> vector<4x4xf32>
    "tpu.trace_stop"() : () -> ()
    %cst_57 = arith.constant dense<0xFF800000> : vector<4xf32>
    %97 = vector.multi_reduction <maximumf>, %96, %cst_57 [1] : vector<4x4xf32> to vector<4xf32>
    %98 = vector.shape_cast %97 : vector<4xf32> to vector<4x1xf32>
    %99 = vector.broadcast %98 : vector<4x1xf32> to vector<4x4xf32>
    %100 = arith.subf %96, %99 : vector<4x4xf32>
    %101 = math.exp %100 : vector<4x4xf32>
    %cst_58 = arith.constant dense<0.000000e+00> : vector<4xf32>
    %102 = vector.multi_reduction <add>, %101, %cst_58 [1] : vector<4x4xf32> to vector<4xf32>
    %103 = vector.shape_cast %102 : vector<4xf32> to vector<4x1xf32>
    %104 = tpu.reciprocal %103 {approx = true} : vector<4x1xf32> -> vector<4x1xf32>
    %105 = vector.broadcast %104 : vector<4x1xf32> to vector<4x4xf32>
    %106 = arith.mulf %101, %105 : vector<4x4xf32>
    %107 = arith.truncf %106 : vector<4x4xf32> to vector<4x4xbf16>
    %cst_59 = arith.constant dense<0.000000e+00> : vector<4x8xf32>
    %108 = tpu.matmul %107, %95, %cst_59 {dimension_numbers = #tpu.dot_dimension_numbers<[1], [0], [0], [1], [0, 0, 1, 1], [], []>} : vector<4x4xbf16>, vector<4x8xbf16>, vector<4x8xf32> -> vector<4x8xf32>
    %c0_60 = arith.constant 0 : index
    %c16_61 = arith.constant 16 : index
    %109 = vector.load %arg8[%c0_60, %c16_61] : memref<4x32xf32, #tpu.memory_space<vmem>>, vector<4x8xf32>
    tpu.vector_store %arg8[%c0_60, %c16_61], %108 {strides = array<i32>} : memref<4x32xf32, #tpu.memory_space<vmem>>, vector<4x8xf32>,
    %c0_62 = arith.constant 0 : index
    %c24 = arith.constant 24 : index
    %110 = vector.load %arg7[%c0_62, %c24] : memref<4x96xf32, #tpu.memory_space<vmem>>, vector<4x8xf32>
    %111 = arith.truncf %110 : vector<4x8xf32> to vector<4x8xbf16>
    %c0_63 = arith.constant 0 : index
    %c56 = arith.constant 56 : index
    %112 = vector.load %arg7[%c0_63, %c56] : memref<4x96xf32, #tpu.memory_space<vmem>>, vector<4x8xf32>
    %113 = arith.truncf %112 : vector<4x8xf32> to vector<4x8xbf16>
    %c0_64 = arith.constant 0 : index
    %c88 = arith.constant 88 : index
    %114 = vector.load %arg7[%c0_64, %c88] : memref<4x96xf32, #tpu.memory_space<vmem>>, vector<4x8xf32>
    %115 = arith.truncf %114 : vector<4x8xf32> to vector<4x8xbf16>
    "tpu.trace_start"() <{level = 10 : i32, message = "nd,md->nm"}> : () -> ()
    %cst_65 = arith.constant dense<0.000000e+00> : vector<4x4xf32>
    %116 = tpu.matmul %111, %113, %cst_65 {dimension_numbers = #tpu.dot_dimension_numbers<[1], [1], [0], [0], [0, 0, 1, 0], [], []>} : vector<4x8xbf16>, vector<4x8xbf16>, vector<4x4xf32> -> vector<4x4xf32>
    "tpu.trace_stop"() : () -> ()
    %cst_66 = arith.constant dense<0xFF800000> : vector<4xf32>
    %117 = vector.multi_reduction <maximumf>, %116, %cst_66 [1] : vector<4x4xf32> to vector<4xf32>
    %118 = vector.shape_cast %117 : vector<4xf32> to vector<4x1xf32>
    %119 = vector.broadcast %118 : vector<4x1xf32> to vector<4x4xf32>
    %120 = arith.subf %116, %119 : vector<4x4xf32>
    %121 = math.exp %120 : vector<4x4xf32>
    %cst_67 = arith.constant dense<0.000000e+00> : vector<4xf32>
    %122 = vector.multi_reduction <add>, %121, %cst_67 [1] : vector<4x4xf32> to vector<4xf32>
    %123 = vector.shape_cast %122 : vector<4xf32> to vector<4x1xf32>
    %124 = tpu.reciprocal %123 {approx = true} : vector<4x1xf32> -> vector<4x1xf32>
    %125 = vector.broadcast %124 : vector<4x1xf32> to vector<4x4xf32>
    %126 = arith.mulf %121, %125 : vector<4x4xf32>
    %127 = arith.truncf %126 : vector<4x4xf32> to vector<4x4xbf16>
    %cst_68 = arith.constant dense<0.000000e+00> : vector<4x8xf32>
    %128 = tpu.matmul %127, %115, %cst_68 {dimension_numbers = #tpu.dot_dimension_numbers<[1], [0], [0], [1], [0, 0, 1, 1], [], []>} : vector<4x4xbf16>, vector<4x8xbf16>, vector<4x8xf32> -> vector<4x8xf32>
    %c0_69 = arith.constant 0 : index
    %c24_70 = arith.constant 24 : index
    %129 = vector.load %arg8[%c0_69, %c24_70] : memref<4x32xf32, #tpu.memory_space<vmem>>, vector<4x8xf32>
    tpu.vector_store %arg8[%c0_69, %c24_70], %128 {strides = array<i32>} : memref<4x32xf32, #tpu.memory_space<vmem>>, vector<4x8xf32>,
    %c0_71 = arith.constant 0 : index
    %c0_72 = arith.constant 0 : index
    %130 = vector.load %arg8[%c0_71, %c0_72] : memref<4x32xf32, #tpu.memory_space<vmem>>, vector<4x32xf32>
    %131 = arith.truncf %130 : vector<4x32xf32> to vector<4x32xbf16>
    %cst_73 = arith.constant dense<0.000000e+00> : vector<4x32xf32>
    %132 = tpu.matmul %131, %3, %cst_73 {dimension_numbers = #tpu.dot_dimension_numbers<[1], [0], [0], [1], [0, 0, 1, 1], [], []>} : vector<4x32xbf16>, vector<32x32xbf16>, vector<4x32xf32> -> vector<4x32xf32>
    %133 = vector.broadcast %6 : vector<1x32xf32> to vector<4x32xf32>
    %134 = arith.addf %132, %133 : vector<4x32xf32>
    %135 = arith.addf %22, %134 : vector<4x32xf32>
    %cst_74 = arith.constant dense<0.000000e+00> : vector<4xf32>
    %136 = vector.multi_reduction <add>, %135, %cst_74 [1] : vector<4x32xf32> to vector<4xf32>
    %137 = vector.shape_cast %136 : vector<4xf32> to vector<4x1xf32>
    %cst_75 = arith.constant 3.200000e+01 : f32
    %138 = vector.broadcast %cst_75 : f32 to vector<4x1xf32>
    %139 = arith.divf %137, %138 : vector<4x1xf32>
    %140 = vector.broadcast %139 : vector<4x1xf32> to vector<4x32xf32>
    %141 = arith.subf %135, %140 : vector<4x32xf32>
    %142 = arith.mulf %141, %141 : vector<4x32xf32>
    %cst_76 = arith.constant dense<0.000000e+00> : vector<4xf32>
    %143 = vector.multi_reduction <add>, %142, %cst_76 [1] : vector<4x32xf32> to vector<4xf32>
    %144 = vector.shape_cast %143 : vector<4xf32> to vector<4x1xf32>
    %cst_77 = arith.constant 3.200000e+01 : f32
    %145 = vector.broadcast %cst_77 : f32 to vector<4x1xf32>
    %146 = arith.divf %144, %145 : vector<4x1xf32>
    %147 = vector.broadcast %139 : vector<4x1xf32> to vector<4x32xf32>
    %148 = arith.subf %135, %147 : vector<4x32xf32>
    %cst_78 = arith.constant 9.99999997E-7 : f32
    %149 = vector.broadcast %cst_78 : f32 to vector<4x1xf32>
    %150 = arith.addf %146, %149 : vector<4x1xf32>
    %151 = math.rsqrt %150 : vector<4x1xf32>
    %152 = vector.broadcast %151 : vector<4x1xf32> to vector<4x32xf32>
    %153 = arith.mulf %148, %152 : vector<4x32xf32>
    %154 = vector.broadcast %12 : vector<1x32xf32> to vector<4x32xf32>
    %155 = arith.mulf %153, %154 : vector<4x32xf32>
    %156 = vector.broadcast %13 : vector<1x32xf32> to vector<4x32xf32>
    %157 = arith.addf %155, %156 : vector<4x32xf32>
    %158 = arith.truncf %157 : vector<4x32xf32> to vector<4x32xbf16>
    %cst_79 = arith.constant dense<0.000000e+00> : vector<4x64xf32>
    %159 = tpu.matmul %158, %4, %cst_79 {dimension_numbers = #tpu.dot_dimension_numbers<[1], [0], [0], [1], [0, 0, 1, 1], [], []>} : vector<4x32xbf16>, vector<32x64xbf16>, vector<4x64xf32> -> vector<4x64xf32>
    %160 = vector.broadcast %7 : vector<1x64xf32> to vector<4x64xf32>
    %161 = arith.addf %159, %160 : vector<4x64xf32>
    %cst_80 = arith.constant 5.000000e-01 : f32
    %162 = vector.broadcast %cst_80 : f32 to vector<4x64xf32>
    %163 = arith.mulf %162, %161 : vector<4x64xf32>
    %cst_81 = arith.constant 4.471500e-02 : f32
    %164 = vector.broadcast %cst_81 : f32 to vector<4x64xf32>
    %165 = arith.mulf %164, %161 : vector<4x64xf32>
    %166 = arith.mulf %165, %161 : vector<4x64xf32>
    %167 = arith.mulf %166, %161 : vector<4x64xf32>
    %168 = arith.addf %161, %167 : vector<4x64xf32>
    %cst_82 = arith.constant 0.797884583 : f32
    %169 = vector.broadcast %cst_82 : f32 to vector<4x64xf32>
    %170 = arith.mulf %169, %168 : vector<4x64xf32>
    %171 = math.tanh %170 : vector<4x64xf32>
    %cst_83 = arith.constant 1.000000e+00 : f32
    %172 = vector.broadcast %cst_83 : f32 to vector<4x64xf32>
    %173 = arith.addf %172, %171 : vector<4x64xf32>
    %174 = arith.mulf %163, %173 : vector<4x64xf32>
    %175 = arith.truncf %174 : vector<4x64xf32> to vector<4x64xbf16>
    %cst_84 = arith.constant dense<0.000000e+00> : vector<4x32xf32>
    %176 = tpu.matmul %175, %1, %cst_84 {dimension_numbers = #tpu.dot_dimension_numbers<[1], [0], [0], [1], [0, 0, 1, 1], [], []>} : vector<4x64xbf16>, vector<64x32xbf16>, vector<4x32xf32> -> vector<4x32xf32>
    %177 = vector.broadcast %14 : vector<1x32xf32> to vector<4x32xf32>
    %178 = arith.addf %176, %177 : vector<4x32xf32>
    %179 = arith.addf %135, %178 : vector<4x32xf32>
    %cst_85 = arith.constant dense<0.000000e+00> : vector<4xf32>
    %180 = vector.multi_reduction <add>, %179, %cst_85 [1] : vector<4x32xf32> to vector<4xf32>
    %181 = vector.shape_cast %180 : vector<4xf32> to vector<4x1xf32>
    %cst_86 = arith.constant 3.200000e+01 : f32
    %182 = vector.broadcast %cst_86 : f32 to vector<4x1xf32>
    %183 = arith.divf %181, %182 : vector<4x1xf32>
    %184 = vector.broadcast %183 : vector<4x1xf32> to vector<4x32xf32>
    %185 = arith.subf %179, %184 : vector<4x32xf32>
    %186 = arith.mulf %185, %185 : vector<4x32xf32>
    %cst_87 = arith.constant dense<0.000000e+00> : vector<4xf32>
    %187 = vector.multi_reduction <add>, %186, %cst_87 [1] : vector<4x32xf32> to vector<4xf32>
    %188 = vector.shape_cast %187 : vector<4xf32> to vector<4x1xf32>
    %cst_88 = arith.constant 3.200000e+01 : f32
    %189 = vector.broadcast %cst_88 : f32 to vector<4x1xf32>
    %190 = arith.divf %188, %189 : vector<4x1xf32>
    %191 = vector.broadcast %183 : vector<4x1xf32> to vector<4x32xf32>
    %192 = arith.subf %179, %191 : vector<4x32xf32>
    %cst_89 = arith.constant 9.99999997E-7 : f32
    %193 = vector.broadcast %cst_89 : f32 to vector<4x1xf32>
    %194 = arith.addf %190, %193 : vector<4x1xf32>
    %195 = math.rsqrt %194 : vector<4x1xf32>
    %196 = vector.broadcast %195 : vector<4x1xf32> to vector<4x32xf32>
    %197 = arith.mulf %192, %196 : vector<4x32xf32>
    %198 = vector.broadcast %15 : vector<1x32xf32> to vector<4x32xf32>
    %199 = arith.mulf %197, %198 : vector<4x32xf32>
    %200 = vector.broadcast %16 : vector<1x32xf32> to vector<4x32xf32>
    %201 = arith.addf %199, %200 : vector<4x32xf32>
    %cst_90 = arith.constant 0.000000e+00 : f32
    %202 = vector.broadcast %cst_90 : f32 to vector<4x96xf32>
    %203 = tpu.concatenate %201, %202 in 1 : vector<4x32xf32>, vector<4x96xf32> -> vector<4x128xf32>
    %c0_91 = arith.constant 0 : index
    %c0_92 = arith.constant 0 : index
    %c0_93 = arith.constant 0 : index
    %204 = vector.load %arg6[%c0_91, %c0_92, %c0_93] : memref<1x4x128xf32, #tpu.memory_space<vmem>>, vector<1x4x128xf32>
    %205 = vector.shape_cast %204 : vector<1x4x128xf32> to vector<4x128xf32>
    %206 = vector.shape_cast %203 : vector<4x128xf32> to vector<1x4x128xf32>
    tpu.vector_store %arg6[%c0_91, %c0_92, %c0_93], %206 {strides = array<i32>} : memref<1x4x128xf32, #tpu.memory_space<vmem>>, vector<1x4x128xf32>,
    return
  }
  func.func @transform_0(%arg0: i32) -> (i32, i32, i32) {
    %c0_i32 = arith.constant 0 : i32
    %c0_i32_0 = arith.constant 0 : i32
    %c0_i32_1 = arith.constant 0 : i32
    return %arg0, %c0_i32, %c0_i32_0 : i32, i32, i32
  }
  func.func @transform_1(%arg0: i32) -> (i32, i32) {
    %c0_i32 = arith.constant 0 : i32
    %c0_i32_0 = arith.constant 0 : i32
    %c0_i32_1 = arith.constant 0 : i32
    return %c0_i32, %c0_i32_0 : i32, i32
  }
  func.func @transform_2(%arg0: i32) -> (i32, i32) {
    %c0_i32 = arith.constant 0 : i32
    %c0_i32_0 = arith.constant 0 : i32
    %c0_i32_1 = arith.constant 0 : i32
    return %c0_i32, %c0_i32_0 : i32, i32
  }
  func.func @transform_3(%arg0: i32) -> (i32, i32) {
    %c0_i32 = arith.constant 0 : i32
    %c0_i32_0 = arith.constant 0 : i32
    %c0_i32_1 = arith.constant 0 : i32
    return %c0_i32, %c0_i32_0 : i32, i32
  }
  func.func @transform_4(%arg0: i32) -> (i32, i32) {
    %c0_i32 = arith.constant 0 : i32
    %c0_i32_0 = arith.constant 0 : i32
    %c0_i32_1 = arith.constant 0 : i32
    return %c0_i32, %c0_i32_0 : i32, i32
  }
  func.func @transform_5(%arg0: i32) -> (i32, i32, i32) {
    %c0_i32 = arith.constant 0 : i32
    %c0_i32_0 = arith.constant 0 : i32
    %c0_i32_1 = arith.constant 0 : i32
    return %arg0, %c0_i32, %c0_i32_0 : i32, i32, i32
  }
}

</mosaic_0001>

<bundles_post_ra>
// kernel: siglip_vision_transformer.1
= control target key start
LH: loop header
LB: loop body
LE: loop exit
PB: predicated region body
PF: predicated region fallthrough
CT: control target
= control target key end

     0   :  { %10 = vsyncpa [#allocation5], 0  ;;  %s2050_s0 = inlined_call_operand.vmem [shape: bf16[2,4,256], index: 0, kind: input, shape index: {}]   ;;  %s2051_s1 = inlined_call_operand.vmem [shape: bf16[320,32], index: 1, kind: input, shape index: {}]   ;;  %s2052_s2 = inlined_call_operand.vmem [shape: bf16[32,192], index: 2, kind: input, shape index: {}]   ;;  %s2053_s3 = inlined_call_operand.vmem [shape: f32[1,192], index: 3, kind: input, shape index: {}]   ;;  %s2054_s4 = inlined_call_operand.vmem [shape: f32[12,32], index: 4, kind: input, shape index: {}]   ;;  %s2055_s5 = inlined_call_operand.hbm [shape: f32[2,4,128], index: 5, kind: output, shape index: {}]  }
   0x1   :  { %12 = vsyncpa [#allocation5 + $0x1], 0  ;;  %s1732_s18 = smov 0   ;;  %s1734_s19 = smov 0  }
   0x2   :  { %s1736_s20 = smov 0   ;;  %s1738_s21 = smov 0  }
   0x3 LB: > { %s1753_s22 = sadd.s32 4294967295, %s1682_s21   ;;  %s1321_s23 = sadd.s32 4294967294, %s1682_s21   ;;  %s1682_s21 = sphi %s1738_s21, %s2061_s21   ;;  %s1678_s20 = sphi %s1736_s20, %s2060_s20   ;;  %s1674_s19 = sphi %s1734_s19, %s2059_s19   ;;  %s1670_s18 = sphi %s1732_s18, %s2058_s18  }
   0x4   : > { %s1757_s24 = sadd.s32 1, %s1682_s21   ;;  %s135_s25 = sadd.s32 1, %s1678_s20 }
   0x5   : > { %s132_s26 = ssub.s32 %s1682_s21, %s1757_s24  ;;  %p145_p0 = scmp.ne.s32.totalorder %s1678_s20, %s1674_s19 }
   0x6   : > { %p133_p1 = scmp.eq.s32.totalorder %s132_s26, 0  ;;  %p146_p2 = scmp.eq.s32.totalorder %s1753_s22, 1 }
   0x7   : > { %p151_p3 = scmp.ne.s32.totalorder %s1674_s19, %s1670_s18  ;;  %p152_p4 = scmp.eq.s32.totalorder %s1321_s23, 1 }
   0x8   : > { %s1768_s27 = scalar_select %p133_p1, %s1678_s20, %s135_s25  }
   0x9   : > { %p1770_p5 = por %p146_p2, %p145_p0  ;;  %p1774_p6 = por %p152_p4, %p151_p3 }
   0xa   : > { %p1324_p7 = scmp.ge.s32.totalorder %s1682_s21, 1  ;;  %p190_p8 = scmp.lt.s32.totalorder %s1682_s21, 3 }
   0xc   : > { %p191_p9 = pnand %p1324_p7, %p190_p8 }
   0xd   : > { %v1572_v0 = vld [vmem:[%s2051_s1 + $0x40] sm:$0xff] (!%p191_p9)   ;;  %v1574_v2 = vld [vmem:[%s2051_s1 + $0x48] sm:$0xff] (!%p191_p9)   ;;  %p218_p10 = scmp.lt.s32.totalorder (!%p191_p9), %s1753_s22, 1  ;;  %v1576_v4 = vld [vmem:[%s2051_s1 + $0x50] sm:$0xff] (!%p191_p9)   ;;  %vm436_vm0 = vcmask (!%p191_p9), 257024   ;;  %v1684_v34 = vmov (!%p191_p9), 0.0  }
   0xe   : > { %194 = sbr.rel (%p191_p9) target bundleno = 3661 (0xe4d), region = 40  ;;  %v1573_v1 = vld [vmem:[%s2051_s1] sm:$0xff] (!%p191_p9)   ;;  %1380 = vmatprep.subr.bf16.mxu0 (!%p191_p9), %v1572_v0  ;;  %v1575_v3 = vld [vmem:[%s2051_s1 + $0x8] sm:$0xff] (!%p191_p9)   ;;  %v1577_v5 = vld [vmem:[%s2051_s1 + $0x10] sm:$0xff] (!%p191_p9)   ;;  %1432 = vmatprep.subr.bf16.mxu1 (!%p191_p9), %v1684_v34  ;;  %vm1685_vm1 = vmmov (!%p191_p9), 0   ;;  %vm480_vm2 = vcmask (!%p191_p9), 261120  }
   0xf   : > { %1381 = vmatpush3.bf16.msra.mxu0 (!%p191_p9), %v1573_v1  ;;  %v1578_v6 = vld [vmem:[%s2051_s1 + $0x58] sm:$0xff] (!%p191_p9)   ;;  %v1580_v8 = vld [vmem:[%s2051_s1 + $0x60] sm:$0xff] (!%p191_p9)   ;;  %v1582_v10 = vld [vmem:[%s2051_s1 + $0x68] sm:$0xff] (!%p191_p9)   ;;  %1436 = vmatprep.mubr.msk.bf16.mxu1 (!%p191_p9), %vm1685_vm1, %v1684_v34  ;;  %vm524_vm3 = vcmask (!%p191_p9), 781312   ;;  %s1686_s8 = smov (!%p191_p9), 64   ;;  %s1687_s9 = smov (!%p191_p9), 96  }
  0x10   : > { %1382 = vmatprep.subr.bf16.mxu0 (!%p191_p9), %v1574_v2  ;;  %v1579_v7 = vld [vmem:[%s2051_s1 + $0x18] sm:$0xff] (!%p191_p9)   ;;  %v1581_v9 = vld [vmem:[%s2051_s1 + $0x20] sm:$0xff] (!%p191_p9)   ;;  %v1583_v12 = vld [vmem:[%s2051_s1 + $0x28] sm:$0xff] (!%p191_p9)   ;;  %vm531_vm4 = vcmask (!%p191_p9), 64512   ;;  %vm597_vm5 = vcmask (!%p191_p9), 1041408   ;;  %vm578_vm6 = vcmask (!%p191_p9), 27648  }
  0x11   : > { %v1584_v14 = vld [vmem:[%s2051_s1 + $0x70] sm:$0xff] (!%p191_p9)   ;;  %v1586_v16 = vld [vmem:[%s2051_s1 + $0x78] sm:$0xff] (!%p191_p9)   ;;  %v1328_v19 = vld [vmem:[%s2054_s4 + $0x4] ss:$0 sm:$0xff] (!%p191_p9)  ;;  %s1688_s10 = smov (!%p191_p9), 80   ;;  %s1690_s12 = smov (!%p191_p9), 120  }
  0x12   : > { %v1585_v15 = vld [vmem:[%s2051_s1 + $0x30] sm:$0xff] (!%p191_p9)   ;;  %v1587_v17 = vld [vmem:[%s2051_s1 + $0x38] sm:$0xff] (!%p191_p9)   ;;  %v274_v24 = vld [vmem:[%s2054_s4] sm:$0xf] (!%p191_p9)  ;;  %s1691_s13 = smov (!%p191_p9), 112   ;;  %s1692_s14 = smov (!%p191_p9), 72  }
  0x13   : > { %1383 = vmatpush3.bf16.msra.mxu0 (!%p191_p9), %v1575_v3  ;;  %v1848_v33 = vld [vmem:[%s2052_s2] ss:$8 sps:$4 sm:$0xff] (!%p191_p9)   ;;  %v1857_v35 = vld [vmem:[%s2052_s2 + $0x10] ss:$8 sps:$4 sm:$0xff] (!%p191_p9)   ;;  %v1346_v40 = vld [vmem:[%s2054_s4 + $0x5] ss:$0 sm:$0xff] (!%p191_p9) }
  0x14   : > { %1384 = vmatprep.subr.bf16.mxu0 (!%p191_p9), %v1576_v4  ;;  %1433 = vmatpush3.bf16.msra.mxu1 (!%p191_p9), %v1848_v33  ;;  %v1347_v42 = vld [vmem:[%s2054_s4 + $0x6] ss:$0 sm:$0xff] (!%p191_p9)  ;;  %v1877_v46 = vld [vmem:[%s2053_s3] ss:$0 sm:$0xff] (!%p191_p9)  ;;  %vm593_vm7 = vcmask (!%p191_p9), 31744   ;;  %vm641_vm8 = vcmask (!%p191_p9), 60416  }
  0x15   : > { %s219_s15 = scalar_select %p218_p10, %s1753_s22, 1  ;;  %1434 = vmatprep.subr.bf16.mxu1 %v1684_v34  ;;  %vm760_vm9 = vcmask 126016   ;;  %vm879_vm10 = vcmask 191616   ;;  %vm998_vm11 = vcmask 257216   ;;  %vm1178_vm12 = vcmask 523264  }
  0x16   : > { %s1694_s16 = smov 48   ;;  %s1695_s17 = smov 56  }
  0x17   : > { %s1379_s26 = sshll.u32 %s219_s15, 2  ;;  %1385 = vmatpush3.bf16.msra.mxu0 %v1577_v5  ;;  %s1693_s15 = smov 104  }
  0x18   : > { %1386 = vmatprep.subr.bf16.mxu0 %v1578_v6  ;;  %s222_s11 = scalar_lea.vmem %s2050_s0, %s1379_s26  ;;  %1435 = vmatpush3.bf16.msra.mxu1 %v1857_v35  ;;  %s1696_s23 = smov 40  }
  0x19   : > { %v1329_v11 = vld.sshfl [vmem:[%s222_s11] sm:$0x33 pattern:$0x76325410]  ;;  %1440 = vmatprep.subr.bf16.mxu1 %v1684_v34  ;;  %s1689_s11 = smov 88   ;;  %s1697_s25 = smov 8  }
  0x1a   : > { %v296_v13 = vcombine.high %v1329_v11, %v1329_v11  ;;  %s1698_s26 = smov 16   ;;  %s1699_s30 = smov 32  }
  0x1b   : > { %1387 = vmatpush3.bf16.msra.mxu0 %v1579_v7  ;;  %s1700_s6 = smov 24  }
  0x1c   : > { %1388 = vmatprep.subr.bf16.mxu0 %v1580_v8  ;;  %427 = vmatprep.mubr.bf16.mxu0 %v296_v13 }
  0x1f   : > { %1389 = vmatpush3.bf16.msra.mxu0 %v1581_v9 }
  0x20   : > { %1390 = vmatprep.subr.bf16.mxu0 %v1582_v10 }
  0x23   : > { %1391 = vmatpush3.bf16.msra.mxu0 %v1583_v12 }
  0x24   : > { %1392 = vmatprep.subr.bf16.mxu0 %v1584_v14 }
  0x27   : > { %1393 = vmatpush3.bf16.msra.mxu0 %v1585_v15 }
  0x28   : > { %1394 = vmatprep.subr.bf16.mxu0 %v1586_v16 }
  0x2b   : > { %1395 = vmatpush3.bf16.msra.mxu0 %v1587_v17 }
  0x2c   : > { %1458 = vmatprep.subr.bf16.mxu0 %v1684_v34 }
  0x2e   : > { %428 = vmatmul.mubr.bf16.vlgmr.msra.gmra.mrb[0].mxu0 %v1329_v11 }
  0x2f   : > { %1460 = vmatprep.mubr.msk.bf16.mxu0 %vm1685_vm1, %v1684_v34 }
 0x101   : > { %v1396_v18 = vpop.f32.mrb[0].mxu0 }
 0x102   : > { %v1397_v20 = vpop.f32.mrb[1].mxu0 }
 0x103   : > { %v1398_v21 = vadd.f32 %v1397_v20, %v1396_v18  ;;  %v1399_v22 = vpop.f32.mrb[2].mxu0 }
 0x104   : > { %v1400_v23 = vpop.f32.mrb[3].mxu0 }
 0x105   : > { %v430_v25 = vadd.f32 %v1398_v21, %v1328_v19 }
 0x107   : > { %v1839_v26 = vadd.f32 %v430_v25, %v274_v24 }
 0x109   : > { %v437_v27 = vsel %vm436_vm0, %v1839_v26, 0.0 }
 0x10a   : > { %438 = vadd.xlane.f32.xlu0 %v437_v27 }
 0x197   : > { %v439_v28 = vpop.xlane.xlu0 %438 }
 0x198   : > { %v441_v29 = vmul.f32 0.03125, %v439_v28 }
 0x19a   : > { %v442_v30 = vsub.f32 %v1839_v26, %v441_v29 }
 0x19c   : > { %v443_v31 = vmul.f32 %v442_v30, %v442_v30 }
 0x19e   : > { %v444_v32 = vsel %vm436_vm0, %v443_v31, 0.0 }
 0x19f   : > { %445 = vadd.xlane.f32.xlu0 %v444_v32 }
 0x22c   : > { %v446_v36 = vpop.xlane.xlu0 %445 }
 0x22d   : > { %v447_v37 = vmul.f32 0.03125, %v446_v36 }
 0x22f   : > { %v448_v38 = vadd.f32 1e-06, %v447_v37 }
 0x231   : > { %1596 = vrsqrt.f32 %v448_v38 }
 0x23b   : > { %v1597_v39 = vpop.eup %1596 }
 0x23c   : > { %v450_v41 = vmul.f32 %v1597_v39, %v442_v30 }
 0x23e   : > { %v455_v43 = vmul.f32 %v1346_v40, %v450_v41 }
 0x240   : > { %v460_v44 = vadd.f32 %v1347_v42, %v455_v43 }
 0x242   : > { %v461_v45 = vpack.c.bf16 %v460_v44, %v460_v44 }
 0x244   : > { %1437 = vmatmul.mubr.msk.bf16.vlgmr.msra.gmra.mrb[0].mxu1 %vm480_vm2, %v461_v45 }
 0x245   : > { %1442 = vmatprep.mubr.msk.bf16.mxu1 %vm1685_vm1, %v1684_v34 }
 0x317   : > { %v518_v47 = vpop.f32.mrb[0].mxu1 }
 0x318   : > { %v519_v48 = vadd.f32 %v1877_v46, %v518_v47  ;;  %v1438_v49 = vpop.f32.mrb[1].mxu1 }
 0x319   : > { %v521_v50 = vpop.f32.mrb[2].mxu1 }
 0x31a   : > { %525 = vst.msk [vmem:[#allocation2] sm:$0xf] %vm524_vm3, %v519_v48  ;;  %v1439_v51 = vpop.f32.mrb[3].mxu1 }
 0x321   : > { %v526_v52 = vld [vmem:[#allocation2] sm:$0xf] }
 0x322   : > { %v527_v53 = vpack.c.bf16 %v526_v52, %v526_v52  ;;  %v762_v63 = vld [vmem:[#allocation2] sm:$0xf] }
 0x323   : > { %v1888_v0 = vpack.c.bf16 %v762_v63, %v762_v63  ;;  %v643_v6 = vld [vmem:[#allocation2] sm:$0xf] }
 0x324   : > { %591 = vrot.lane.b32.xlu0 %v527_v53, %s1686_s8  ;;  %529 = vrot.lane.b32.xlu1 %v527_v53, %s1687_s9  ;;  %v1892_v7 = vpack.c.bf16 %v643_v6, %v643_v6  ;;  %v881_v8 = vld [vmem:[#allocation2] sm:$0xf] }
 0x325   : > { %v1897_v9 = vpack.c.bf16 %v881_v8, %v881_v8 }
 0x396   : > { %v530_v54 = vpop.permute.xlu1 %529  ;;  %v592_v56 = vpop.permute.xlu0 %591 }
 0x397   : > { %v536_v55 = vsel %vm531_vm4, %v530_v54, 0  ;;  %v599_v57 = vsel %vm597_vm5, %v592_v56, 0 }
 0x398   : > { %1441 = vmatpush3.bf16.xpose.msra.mxu1 %v536_v55 }
 0x399   : > { %1446 = vmatprep.subr.bf16.mxu1 %v1684_v34 }
 0x39f   : > { %1443 = vmatmul.mubr.msk.bf16.vlgmr.msra.gmra.mrb[4].mxu1 %vm531_vm4, %v527_v53 }
 0x3a0   : > { %1447 = vmatpush3.bf16.msra.mxu1 %v599_v57  ;;  %1448 = vmatprep.mubr.msk.bf16.mxu1 %vm1685_vm1, %v1684_v34 }
 0x3a1   : > { %1452 = vmatprep.subr.bf16.mxu1 %v1684_v34 }
 0x472   : > { %v572_v58 = vpop.f32.mrb[4].mxu1 }
 0x473   : > { %v1444_v59 = vpop.f32.mrb[5].mxu1  ;;  %v579_v60 = vsel %vm578_vm6, %v572_v58, -inf }
 0x474   : > { %580 = vmax.xlane.f32.xlu1 %v579_v60  ;;  %v575_v61 = vpop.f32.mrb[6].mxu1 }
 0x475   : > { %v1445_v62 = vpop.f32.mrb[7].mxu1 }
 0x485   : > { %767 = vrot.lane.b32.xlu1 %v1888_v0, %s1688_s10 }
 0x501   : > { %v581_v1 = vpop.xlane.xlu1 %580 }
 0x502   : > { %v582_v2 = vsub.f32 %v572_v58, %v581_v1 }
 0x504   : > { %v583_v3 = vmul.f32 1.442695, %v582_v2 }
 0x505   : > { %v768_v17 = vpop.permute.xlu1 %767 }
 0x506   : > { %1598 = vpow2.f32 %v583_v3  ;;  %v773_v19 = vsel %vm531_vm4, %v768_v17, 0 }
 0x510   : > { %v1599_v4 = vpop.eup %1598 }
 0x511   : > { %v585_v5 = vsel %vm578_vm6, %v1599_v4, 0.0 }
 0x512   : > { %586 = vadd.xlane.f32.xlu0 %v585_v5 }
 0x528   : > { %648 = vrot.lane.b32.xlu0 %v1892_v7, %s1689_s11  ;;  %s215_s11 = sand.u32 1, %s1674_s19  }
 0x529   : > { %s1249_s7 = scalar_lea.sflag [#allocation5], %s215_s11 }
 0x52c   : > { %646 = vrot.lane.b32.xlu0 %v1892_v7, %s1690_s12  ;;  %s1325_s12 = sshll.u32 %s215_s11, 2 }
 0x530   : > { %765 = vrot.lane.b32.xlu0 %v1888_v0, %s1691_s13 }
 0x534   : > { %886 = vrot.lane.b32.xlu0 %v1897_v9, %s1692_s14 }
 0x538   : > { %884 = vrot.lane.b32.xlu0 %v1897_v9, %s1693_s15 }
 0x59f   : > { %v587_v10 = vpop.xlane.xlu0 %586 }
 0x5a0   : > { %1600 = vrcp.f32 %v587_v10 }
 0x5a3   : > { %v649_v12 = vpop.permute.xlu0 %648 }
 0x5a4   : > { %v654_v15 = vsel %vm531_vm4, %v649_v12, 0 }
 0x5a7   : > { %v647_v16 = vpop.permute.xlu0 %646 }
 0x5aa   : > { %v1601_v11 = vpop.eup %1600 }
 0x5ab   : > { %v589_v13 = vmul.f32 %v1601_v11, %v1599_v4  ;;  %v766_v18 = vpop.permute.xlu0 %765 }
 0x5ad   : > { %v590_v14 = vpack.c.bf16 %v589_v13, %v589_v13 }
 0x5af   : > { %1449 = vmatmul.mubr.msk.bf16.vlgmr.msra.gmra.mrb[8].mxu1 %vm593_vm7, %v590_v14  ;;  %v887_v20 = vpop.permute.xlu0 %886 }
 0x5b0   : > { %1453 = vmatpush3.bf16.xpose.msra.mxu1 %v654_v15  ;;  %1454 = vmatprep.mubr.msk.bf16.mxu1 %vm1685_vm1, %v1684_v34  ;;  %v892_v21 = vsel %vm531_vm4, %v887_v20, 0 }
 0x5b1   : > { %1464 = vmatprep.subr.bf16.mxu1 %v1684_v34 }
 0x5b3   : > { %v885_v22 = vpop.permute.xlu0 %884 }
 0x5b7   : > { %1455 = vmatmul.mubr.msk.bf16.vlgmr.msra.gmra.mrb[12].mxu1 %vm531_vm4, %v647_v16 }
 0x5b8   : > { %1465 = vmatpush3.bf16.xpose.msra.mxu1 %v773_v19  ;;  %1466 = vmatprep.mubr.msk.bf16.mxu1 %vm1685_vm1, %v1684_v34 }
 0x5b9   : > { %1476 = vmatprep.subr.bf16.mxu1 %v1684_v34 }
 0x5bf   : > { %1467 = vmatmul.mubr.msk.bf16.vlgmr.msra.gmra.mrb[16].mxu1 %vm531_vm4, %v766_v18 }
 0x5c0   : > { %1477 = vmatpush3.bf16.xpose.msra.mxu1 %v892_v21  ;;  %1478 = vmatprep.mubr.msk.bf16.mxu1 %vm1685_vm1, %v1684_v34 }
 0x5c1   : > { %1488 = vmatprep.subr.bf16.mxu1 %v1684_v34 }
 0x5c7   : > { %1479 = vmatmul.mubr.msk.bf16.vlgmr.msra.gmra.mrb[20].mxu1 %vm531_vm4, %v885_v22 }
 0x5c8   : > { %1492 = vmatprep.mubr.msk.bf16.mxu1 %vm1685_vm1, %v1684_v34 }
 0x682   : > { %v635_v23 = vpop.f32.mrb[8].mxu1 }
 0x683   : > { %642 = vst.msk [vmem:[#allocation3] sm:$0xf] %vm641_vm8, %v635_v23  ;;  %v1450_v24 = vpop.f32.mrb[9].mxu1 }
 0x684   : > { %v638_v25 = vpop.f32.mrb[10].mxu1 }
 0x685   : > { %v1451_v27 = vpop.f32.mrb[11].mxu1 }
 0x68a   : > { %v690_v28 = vpop.f32.mrb[12].mxu1 }
 0x68b   : > { %v1456_v29 = vpop.f32.mrb[13].mxu1  ;;  %v696_v30 = vsel %vm578_vm6, %v690_v28, -inf }
 0x68c   : > { %697 = vmax.xlane.f32.xlu0 %v696_v30  ;;  %v693_v31 = vpop.f32.mrb[14].mxu1 }
 0x68d   : > { %v1457_v32 = vpop.f32.mrb[15].mxu1 }
 0x692   : > { %v809_v36 = vpop.f32.mrb[16].mxu1 }
 0x693   : > { %v1468_v37 = vpop.f32.mrb[17].mxu1  ;;  %v815_v38 = vsel %vm578_vm6, %v809_v36, -inf }
 0x694   : > { %816 = vmax.xlane.f32.xlu1 %v815_v38  ;;  %v812_v39 = vpop.f32.mrb[18].mxu1 }
 0x695   : > { %v1469_v40 = vpop.f32.mrb[19].mxu1 }
 0x69a   : > { %v928_v41 = vpop.f32.mrb[20].mxu1 }
 0x69b   : > { %v1480_v42 = vpop.f32.mrb[21].mxu1  ;;  %v934_v43 = vsel %vm578_vm6, %v928_v41, -inf }
 0x69c   : > { %935 = vmax.xlane.f32.xlu0 %v934_v43  ;;  %v931_v44 = vpop.f32.mrb[22].mxu1 }
 0x69d   : > { %v1481_v45 = vpop.f32.mrb[23].mxu1 }
 0x6a5   : > { %827 = vrot.lane.b32.xlu1 %v1888_v0, %s1694_s16 }
 0x719   : > { %v698_v47 = vpop.xlane.xlu0 %697 }
 0x71a   : > { %v699_v48 = vsub.f32 %v690_v28, %v698_v47 }
 0x71c   : > { %v700_v49 = vmul.f32 1.442695, %v699_v48 }
 0x71e   : > { %1602 = vpow2.f32 %v700_v49 }
 0x721   : > { %v817_v50 = vpop.xlane.xlu1 %816 }
 0x722   : > { %v818_v51 = vsub.f32 %v809_v36, %v817_v50  ;;  %v1590_v50 = vld [vmem:[%s2052_s2 + $0x4] ss:$8 sps:$4 sm:$0xff]  }
 0x724   : > { %v819_v52 = vmul.f32 1.442695, %v818_v51 }
 0x725   : > { %v828_v1 = vpop.permute.xlu1 %827 }
 0x726   : > { %1604 = vpow2.f32 %v819_v52 }
 0x728   : > { %v1603_v53 = vpop.eup %1602 }
 0x729   : > { %v936_v54 = vpop.xlane.xlu0 %935  ;;  %v702_v55 = vsel %vm578_vm6, %v1603_v53, 0.0 }
 0x72a   : > { %v937_v56 = vsub.f32 %v928_v41, %v936_v54  ;;  %703 = vadd.xlane.f32.xlu0 %v702_v55  ;;  %v1361_v55 = vld [vmem:[%s2054_s4 + $0x7] ss:$0 sm:$0xff] }
 0x72c   : > { %v938_v57 = vmul.f32 1.442695, %v937_v56 }
 0x72e   : > { %1606 = vpow2.f32 %v938_v57  ;;  %v1362_v57 = vld [vmem:[%s2054_s4 + $0x8] ss:$0 sm:$0xff] }
 0x730   : > { %v1605_v58 = vpop.eup %1604 }
 0x731   : > { %v821_v59 = vsel %vm578_vm6, %v1605_v58, 0.0 }
 0x732   : > { %822 = vadd.xlane.f32.xlu0 %v821_v59 }
 0x738   : > { %v1607_v60 = vpop.eup %1606 }
 0x739   : > { %v940_v61 = vsel %vm578_vm6, %v1607_v60, 0.0 }
 0x73a   : > { %941 = vadd.xlane.f32.xlu1 %v940_v61  ;;  %v1592_v61 = vld [vmem:[%s2051_s1 + $0x80] sm:$0xff]  }
 0x748   : > { %708 = vrot.lane.b32.xlu0 %v1892_v7, %s1695_s17  ;;  %v833_v7 = vsel %vm597_vm5, %v828_v1, 0  ;;  %v1363_v1 = vld [vmem:[%s2053_s3 + $0x1] ss:$0 sm:$0xff]  ;;  %s1376_s17 = sshll.u32 %s1753_s22, 6  ;;  %s1701_s22 = smov [#allocation4]  }
 0x749   : > { %s1624_s9 = sshll.u32 %s1701_s22, 4  ;;  %s1625_s9 = int_to_ptr.vmem [resolvable:$false] %s1624_s9 }
 0x74a   : > { %s1626_s10 = scalar_lea.vmem %s1625_s9, 128 }
 0x74b   : > { %946 = vrot.lane.b32.xlu1 %v1897_v9, %s1696_s23  ;;  %s217_s23 = scalar_lea.vmem [#allocation4], %s1325_s12 }
 0x7b7   : > { %v704_v62 = vpop.xlane.xlu0 %703 }
 0x7b8   : > { %1608 = vrcp.f32 %v704_v62  ;;  %v1593_v62 = vld [vmem:[%s2051_s1 + $0x88] sm:$0xff]  }
 0x7bf   : > { %v823_v63 = vpop.xlane.xlu0 %822 }
 0x7c0   : > { %1610 = vrcp.f32 %v823_v63  ;;  %v1594_v63 = vld [vmem:[%s2051_s1 + $0x90] sm:$0xff]  }
 0x7c2   : > { %v1609_v0 = vpop.eup %1608 }
 0x7c3   : > { %v706_v2 = vmul.f32 %v1609_v0, %v1603_v53  ;;  %v709_v3 = vpop.permute.xlu0 %708  ;;  %v1595_v0 = vld [vmem:[%s2051_s1 + $0x98] sm:$0xff]  }
 0x7c4   : > { %v714_v4 = vsel %vm597_vm5, %v709_v3, 0 }
 0x7c5   : > { %1459 = vmatpush3.bf16.msra.mxu0 %v714_v4  ;;  %v707_v5 = vpack.c.bf16 %v706_v2, %v706_v2 }
 0x7c6   : > { %1470 = vmatprep.subr.bf16.mxu0 %v1684_v34 }
 0x7c7   : > { %v942_v6 = vpop.xlane.xlu1 %941 }
 0x7c8   : > { %1612 = vrcp.f32 %v942_v6  ;;  %1461 = vmatmul.mubr.msk.bf16.vlgmr.msra.gmra.mrb[4].mxu0 %vm593_vm7, %v707_v5 }
 0x7c9   : > { %1471 = vmatpush3.bf16.msra.mxu0 %v833_v7  ;;  %1472 = vmatprep.mubr.msk.bf16.mxu0 %vm1685_vm1, %v1684_v34 }
 0x7ca   : > { %v1611_v8 = vpop.eup %1610  ;;  %1482 = vmatprep.subr.bf16.mxu0 %v1684_v34 }
 0x7cb   : > { %v825_v9 = vmul.f32 %v1611_v8, %v1605_v58  ;;  %v947_v10 = vpop.permute.xlu1 %946 }
 0x7cc   : > { %v952_v12 = vsel %vm597_vm5, %v947_v10, 0 }
 0x7cd   : > { %v826_v11 = vpack.c.bf16 %v825_v9, %v825_v9 }
 0x7d0   : > { %1473 = vmatmul.mubr.msk.bf16.vlgmr.msra.gmra.mrb[8].mxu0 %vm593_vm7, %v826_v11 }
 0x7d1   : > { %1483 = vmatpush3.bf16.msra.mxu0 %v952_v12  ;;  %1484 = vmatprep.mubr.msk.bf16.mxu0 %vm1685_vm1, %v1684_v34 }
 0x7d2   : > { %v1613_v13 = vpop.eup %1612  ;;  %1496 = vmatprep.subr.bf16.mxu0 %v1684_v34 }
 0x7d3   : > { %v944_v14 = vmul.f32 %v1613_v13, %v1607_v60 }
 0x7d5   : > { %v945_v15 = vpack.c.bf16 %v944_v14, %v944_v14 }
 0x7d8   : > { %1485 = vmatmul.mubr.msk.bf16.vlgmr.msra.gmra.mrb[12].mxu0 %vm593_vm7, %v945_v15 }
 0x7d9   : > { %1500 = vmatprep.mubr.msk.bf16.mxu0 %vm1685_vm1, %v1684_v34  ;;  %1497 = vmatpush3.bf16.msra.mxu0 %v1590_v50 }
 0x7da   : > { %1498 = vmatprep.subr.bf16.mxu0 %v1684_v34 }
 0x89b   : > { %v750_v16 = vpop.f32.mrb[4].mxu0 }
 0x89c   : > { %757 = vrot.lane.b32.xlu1 %v750_v16, %s1697_s25  ;;  %v1462_v17 = vpop.f32.mrb[5].mxu0  ;;  %v1367_v16 = vld [vmem:[%s2054_s4 + $0x9] ss:$0 sm:$0xff]  ;;  %s1262_s25 = sshll.u32 %s217_s23, 4  ;;  %s2009_s25 = int_to_ptr.vmem [resolvable:$true] %s1262_s25 }
 0x89d   : > { %v753_v18 = vpop.f32.mrb[6].mxu0  ;;  %s1620_s8 = scalar_lea.vmem %s2009_s25, 64  ;;  %p1627_p0 = scmp.lt.s32.totalorder %s2009_s25, %s1625_s9 }
 0x89e   : > { %v1463_v19 = vpop.f32.mrb[7].mxu0  ;;  %p1621_p11 = scmp.ne.s32.totalorder %s2009_s25, %s1620_s8  ;;  %p1628_p1 = scmp.lt.s32.totalorder %s1626_s10, %s1620_s8 }
 0x8a0   : > { %p1622_p12 = pnand %p1621_p11, %p1770_p5  ;;  %p1629_p2 = por %p1628_p1, %p1627_p0 }
 0x8a2   : > { %p1623_p13 = pneg %p1622_p12 }
 0x8a3   : > { %v869_v20 = vpop.f32.mrb[8].mxu0 }
 0x8a4   : > { %876 = vrot.lane.b32.xlu0 %v869_v20, %s1698_s26  ;;  %v1474_v21 = vpop.f32.mrb[9].mxu0  ;;  %p1630_p3 = pnand %p1629_p2, %p1623_p13 }
 0x8a5   : > { %v872_v22 = vpop.f32.mrb[10].mxu0 }
 0x8a6   : > { %v1475_v23 = vpop.f32.mrb[11].mxu0 }
 0x8a8   : > { %1002 = vrot.lane.b32.xlu0 %v1848_v33, %s1699_s30 }
 0x8ab   : > { %v988_v24 = vpop.f32.mrb[12].mxu0 }
 0x8ac   : > { %995 = vrot.lane.b32.xlu1 %v988_v24, %s1700_s6  ;;  %v1486_v25 = vpop.f32.mrb[13].mxu0  ;;  %1008 = vrot.lane.b32.xlu0 %v1877_v46, %s1699_s30  ;;  %s2007_s6 = scalar_lea.hbm %s2055_s5, %s1376_s17 }
 0x8ad   : > { %v991_v27 = vpop.f32.mrb[14].mxu0 }
 0x8ae   : > { %v1487_v28 = vpop.f32.mrb[15].mxu0 }
 0x8b0   : > { %1004 = vrot.lane.b32.xlu1 %v1857_v35, %s1699_s30 }
 0x90e   : > { %v758_v29 = vpop.permute.xlu1 %757 }
 0x90f   : > { %761 = vst.msk [vmem:[#allocation3] sm:$0xf] %vm760_vm9, %v758_v29 }
 0x916   : > { %v877_v30 = vpop.permute.xlu0 %876 }
 0x917   : > { %880 = vst.msk [vmem:[#allocation3] sm:$0xf] %vm879_vm10, %v877_v30 }
 0x91a   : > { %v1003_v31 = vpop.permute.xlu0 %1002 }
 0x91b   : > { %1489 = vmatpush3.bf16.msra.mxu1 %v1003_v31 }
 0x91c   : > { %1490 = vmatprep.subr.bf16.mxu1 %v1684_v34 }
 0x91e   : > { %v996_v33 = vpop.permute.xlu1 %995  ;;  %v1009_v35 = vpop.permute.xlu0 %1008 }
 0x91f   : > { %999 = vst.msk [vmem:[#allocation3] sm:$0xf] %vm998_vm11, %v996_v33 }
 0x922   : > { %v1005_v32 = vpop.permute.xlu1 %1004 }
 0x923   : > { %1491 = vmatpush3.bf16.msra.mxu1 %v1005_v32 }
 0x924   : > { %1504 = vmatprep.subr.bf16.mxu1 %v1684_v34 }
 0x926   : > { %v1000_v46 = vld [vmem:[#allocation3] sm:$0xf] }
 0x927   : > { %v1001_v36 = vpack.c.bf16 %v1000_v46, %v1000_v46  ;;  %v1373_v46 = vld [vmem:[%s2054_s4 + $0xa] ss:$0 sm:$0xff] }
 0x929   : > { %1493 = vmatmul.mubr.msk.bf16.vlgmr.msra.gmra.mrb[24].mxu1 %vm480_vm2, %v1001_v36 }
 0x92a   : > { %1512 = vmatprep.mubr.msk.bf16.mxu1 %vm1685_vm1, %v1684_v34  ;;  %1505 = vmatpush3.bf16.msra.mxu1 %v1592_v61 }
 0x92b   : > { %1506 = vmatprep.subr.bf16.mxu1 %v1684_v34 }
 0x92e   : > { %1507 = vmatpush3.bf16.msra.mxu1 %v1593_v62 }
 0x92f   : > { %1508 = vmatprep.subr.bf16.mxu1 %v1684_v34 }
 0x932   : > { %1509 = vmatpush3.bf16.msra.mxu1 %v1594_v63 }
 0x933   : > { %1510 = vmatprep.subr.bf16.mxu1 %v1684_v34 }
 0x936   : > { %1511 = vmatpush3.bf16.msra.mxu1 %v1595_v0 }
 0x9fc   : > { %v1048_v37 = vpop.f32.mrb[24].mxu1 }
 0x9fd   : > { %v1049_v38 = vadd.f32 %v1048_v37, %v1009_v35  ;;  %v1494_v39 = vpop.f32.mrb[25].mxu1  ;;  %v1374_v35 = vld [vmem:[%s2054_s4 + $0xb] ss:$0 sm:$0xff] }
 0x9fe   : > { %v1051_v40 = vpop.f32.mrb[26].mxu1 }
 0x9ff   : > { %v1952_v41 = vadd.f32 %v1049_v38, %v1839_v26  ;;  %v1495_v42 = vpop.f32.mrb[27].mxu1  ;;  %v1591_v26 = vld [vmem:[%s2052_s2 + $0x14] ss:$8 sps:$4 sm:$0xff]  }
 0xa00   : > { %1499 = vmatpush3.bf16.msra.mxu0 %v1591_v26 }
 0xa01   : > { %v1055_v43 = vsel %vm436_vm0, %v1952_v41, 0.0 }
 0xa02   : > { %1056 = vadd.xlane.f32.xlu1 %v1055_v43 }
 0xa8f   : > { %v1057_v44 = vpop.xlane.xlu1 %1056 }
 0xa90   : > { %v1058_v45 = vmul.f32 0.03125, %v1057_v44 }
 0xa92   : > { %v1059_v47 = vsub.f32 %v1952_v41, %v1058_v45 }
 0xa94   : > { %v1060_v48 = vmul.f32 %v1059_v47, %v1059_v47 }
 0xa96   : > { %v1061_v49 = vsel %vm436_vm0, %v1060_v48, 0.0 }
 0xa97   : > { %1062 = vadd.xlane.f32.xlu0 %v1061_v49 }
 0xb24   : > { %v1063_v51 = vpop.xlane.xlu0 %1062 }
 0xb25   : > { %v1064_v52 = vmul.f32 0.03125, %v1063_v51 }
 0xb27   : > { %v1065_v53 = vadd.f32 1e-06, %v1064_v52 }
 0xb29   : > { %1614 = vrsqrt.f32 %v1065_v53 }
 0xb33   : > { %v1615_v54 = vpop.eup %1614 }
 0xb34   : > { %v1067_v56 = vmul.f32 %v1615_v54, %v1059_v47 }
 0xb36   : > { %v1072_v58 = vmul.f32 %v1361_v55, %v1067_v56 }
 0xb38   : > { %v1077_v59 = vadd.f32 %v1362_v57, %v1072_v58 }
 0xb3a   : > { %v1078_v60 = vpack.c.bf16 %v1077_v59, %v1077_v59 }
 0xb3c   : > { %1501 = vmatmul.mubr.msk.bf16.vlgmr.msra.gmra.mrb[16].mxu0 %vm480_vm2, %v1078_v60 }
 0xc0f   : > { %v1134_v2 = vpop.f32.mrb[16].mxu0 }
 0xc10   : > { %v1135_v3 = vadd.f32 %v1363_v1, %v1134_v2  ;;  %v1502_v4 = vpop.f32.mrb[17].mxu0 }
 0xc11   : > { %v1137_v5 = vpop.f32.mrb[18].mxu0 }
 0xc12   : > { %v1141_v6 = vmul.f32 0.044715, %v1135_v3  ;;  %v1503_v7 = vpop.f32.mrb[19].mxu0  ;;  %v1140_v13 = vmul.f32 0.5, %v1135_v3 }
 0xc14   : > { %v1142_v8 = vmul.f32 %v1141_v6, %v1135_v3 }
 0xc16   : > { %v1143_v9 = vmul.f32 %v1142_v8, %v1135_v3 }
 0xc18   : > { %v1144_v10 = vadd.f32 %v1143_v9, %v1135_v3 }
 0xc1a   : > { %v1145_v11 = vmul.f32 0.7978846, %v1144_v10 }
 0xc1c   : > { %1616 = vtanh.f32 %v1145_v11 }
 0xc26   : > { %v1617_v12 = vpop.eup %1616 }
 0xc27   : > { %v1147_v14 = vadd.f32 1.0, %v1617_v12 }
 0xc29   : > { %v1148_v34 = vmul.f32 %v1147_v14, %v1140_v13 }
 0xc2b   : > { %v1149_v15 = vpack.c.bf16 %v1148_v34, %v1148_v34 }
 0xc2d   : > { %1513 = vmatmul.mubr.msk.bf16.vlgmr.msra.gmra.mrb[28].mxu1 %vm1178_vm12, %v1149_v15 }
 0xd00   : > { %v1216_v17 = vpop.f32.mrb[28].mxu1 }
 0xd01   : > { %v1217_v18 = vadd.f32 %v1367_v16, %v1216_v17  ;;  %v1514_v19 = vpop.f32.mrb[29].mxu1 }
 0xd02   : > { %v1219_v20 = vpop.f32.mrb[30].mxu1 }
 0xd03   : > { %v1515_v21 = vpop.f32.mrb[31].mxu1  ;;  %v1222_v22 = vadd.f32 %v1217_v18, %v1952_v41 }
 0xd05   : > { %v1223_v23 = vsel %vm436_vm0, %v1222_v22, 0.0 }
 0xd06   : > { %1224 = vadd.xlane.f32.xlu0 %v1223_v23 }
 0xd93   : > { %v1225_v24 = vpop.xlane.xlu0 %1224 }
 0xd94   : > { %v1226_v25 = vmul.f32 0.03125, %v1225_v24 }
 0xd96   : > { %v1227_v27 = vsub.f32 %v1222_v22, %v1226_v25 }
 0xd98   : > { %v1228_v28 = vmul.f32 %v1227_v27, %v1227_v27 }
 0xd9a   : > { %v1229_v29 = vsel %vm436_vm0, %v1228_v28, 0.0 }
 0xd9b   : > { %1230 = vadd.xlane.f32.xlu0 %v1229_v29 }
 0xe28   : > { %v1231_v30 = vpop.xlane.xlu0 %1230 }
 0xe29   : > { %v1232_v31 = vmul.f32 0.03125, %v1231_v30 }
 0xe2b   : > { %v1233_v33 = vadd.f32 1e-06, %v1232_v31 }
 0xe2d   : > { %1618 = vrsqrt.f32 %v1233_v33 }
 0xe37   : > { %v1619_v32 = vpop.eup %1618 }
 0xe38   : > { %v1235_v36 = vmul.f32 %v1619_v32, %v1227_v27 }
 0xe3a   : > { %v1240_v37 = vmul.f32 %v1373_v46, %v1235_v36 }
 0xe3c   : > { %v1245_v38 = vadd.f32 %v1374_v35, %v1240_v37 }
 0xe3e   : > { %v1246_v39 = vsel %vm480_vm2, %v1245_v38, 0.0 }
 0xe3f   : > { %1247 = vst [vmem:[%s217_s23] sm:$0xf] %v1246_v39 }
 0xe40   : > { %1633 = shalt.err (!%p1630_p3)
}
 0xe41   : > { %s1634_s11 = scalar_lea.hbm %s2007_s6, 64  ;;  %s1638_s14 = scalar_lea.hbm %s2055_s5, 128 }
 0xe42   : > { %p1635_p4 = scmp.ne.s32.totalorder %s2007_s6, %s1634_s11  ;;  %p1639_p9 = scmp.lt.u32.totalorder %s2007_s6, %s2055_s5 }
 0xe43   : > { %p1640_p10 = scmp.lt.u32.totalorder %s1638_s14, %s1634_s11  ;;  %p1642_p12 = scmp.lt.u32.totalorder %s1634_s11, %s2007_s6 }
 0xe44   : > { %p1636_p7 = pnand %p1635_p4, %p1770_p5 }
 0xe45   : > { %p1641_p11 = por %p1640_p10, %p1639_p9 }
 0xe46   : > { %p1637_p8 = pneg %p1636_p7 }
 0xe47   : > { %p1643_p13 = por %p1642_p12, %p1641_p11 }
 0xe49   : > { %p1644_p0 = pnand %p1643_p13, %p1637_p8 }
 0xe4b   : > { %1647 = shalt.err (!%p1644_p0)
}
 0xe4c   : > { %1516 = dma.vmem_to_hbm [thread:$0]  (%p1770_p5), %s2009_s25, 64, %s2007_s6, %s1249_s7  }
 0xe4d PF: > { %p1522_p1 = scmp.ge.s32.totalorder %s1682_s21, 2  ;;  %s1274_s17 = sand.u32 1, %s1670_s18  }
 0xe4e   : > { %s1275_s23 = scalar_lea.sflag [#allocation5], %s1274_s17 }
 0xe4f   : > { %p1519_p2 = pnand %p1522_p1, %p1774_p6 }
 0xe51   : > { %1665 = dma.done.wait (!%p1519_p2), %s1275_s23, 64  }
 0xe52   : > { %1667 = vsyncadd (!%p1519_p2), %s1275_s23, 4294967232  ;;  %p15_p3 = scmp.ge.s32.totalorder %s1757_s24, 4   ;;  %s2058_s18 = smov %s1674_s19 }
 0xe53   : > { %s2059_s19 = smov %s1678_s20  ;;  %s2060_s20 = smov %s1768_s27 }
 0xe54   : > { %s2061_s21 = smov %s1757_s24  ;;  %17 = sbr.rel (!%p15_p3) target bundleno = 3 (0x3), region = 75 }
 0xe5b   :  { %1280 = vsyncpa [#allocation5], 1 }
 0xe5c   :  { %1282 = vsyncpa [#allocation5 + $0x1], 1 }

</bundles_post_ra>
